<compile_context>
chip_gen: v6e
topology: v6e:2x2x1
jax: 0.10.0
libtpu: 0.0.40
codegen_flags: <defaults>
</compile_context>

<pallas_src>
import functools
import inspect
import random as pyrandom

import jax
import jax.numpy as jnp
import numpy as np
from jax.experimental import pallas as pl
from jax.experimental.pallas import tpu as pltpu


# ----------------------------------------------------------------------------
# Fused Pallas kernel: optional FIR-along-time + optional time-chunk zeroing.
#
# Layout: x (B, T, C) is viewed as (rows=B, lanes=T*C): the (time, channel)
# pair is flattened onto the lane axis (lane-dense).  A time shift of k samples
# is a lane shift of k*C, realized with pltpu.roll (XLU slot) plus a per-tap
# constant coefficient vector that supplies the zero 'same' padding in-kernel.
# ----------------------------------------------------------------------------
def _make_fused_kernel(taps, C, L, apply_fir, apply_chunk):
    """taps: tuple of Python floats (compile-time constants) or None."""

    def kernel(*refs):
        if apply_chunk:
            s_ref, e_ref, x_ref, o_ref = refs
        else:
            x_ref, o_ref = refs

        x = x_ref[...].astype(jnp.float32)          # (R_TILE, L)
        lane = jax.lax.broadcasted_iota(jnp.int32, x.shape, 1)

        y = x
        if apply_fir:
            K = len(taps)
            P = K // 2
            acc = jnp.zeros_like(x)
            for k in range(K):                      # small K -> static unroll
                s = (P - k) * C                     # lane shift for this tap
                sh = s % L
                rolled = pltpu.roll(x, shift=sh, axis=1) if sh else x
                tap = jnp.float32(taps[k])
                # zero 'same' padding folded into a constant coefficient:
                # valid source index (lane - s) must lie inside [0, L).  For
                # s >= 0 only the lower bound can fail; for s < 0 only the
                # upper one -> a single compare per tap; center tap mask-free.
                if s > 0:
                    coef = jnp.where(lane >= s, tap, jnp.float32(0.0))
                    acc = acc + rolled * coef
                elif s < 0:
                    coef = jnp.where(lane < L + s, tap, jnp.float32(0.0))
                    acc = acc + rolled * coef
                else:
                    acc = acc + x * tap
            y = acc

        if apply_chunk:
            # drop lanes in [start*C, end*C) per row
            keep = (lane < s_ref[...]) | (lane >= e_ref[...])
            y = jnp.where(keep, y, jnp.float32(0.0))

        o_ref[...] = y.astype(o_ref.dtype)

    return kernel


def _pick_row_tile(B, L):
    """Adaptive row tile.

    Full-batch block when B <= 8 (full-dim blocks are always legal).  Otherwise
    a multiple of 8 sized so the block lands in the ~1-4 MiB sweet spot, while
    keeping at least 2 grid steps when possible (v7x has 2 TensorCores).
    """
    if B <= 8:
        return int(B)
    row_bytes = L * 4                         # f32 working set
    target = 2 << 20                          # ~2 MiB blocks
    r = max(8, (target // row_bytes) // 8 * 8)
    cap = max(8, ((4 << 20) // row_bytes) // 8 * 8)   # block <= ~4 MiB
    r = min(r, cap)
    half = max(8, (((B + 1) // 2) + 7) // 8 * 8)      # >= 2 grid steps
    r = min(r, half)
    return int(r)


@functools.lru_cache(maxsize=None)
def _build_augment_fn(B, T, C, dtype_name, taps, apply_fir, apply_chunk):
    """Build (and cache) a jitted fused-augmentation function for one config."""
    L = T * C
    out_dtype = jnp.dtype(dtype_name)
    R_TILE = _pick_row_tile(B, L)
    grid_r = pl.cdiv(B, R_TILE)

    kernel = _make_fused_kernel(taps, C, L, apply_fir, apply_chunk)

    in_specs = []
    if apply_chunk:
        in_specs += [pl.BlockSpec((R_TILE, 1), lambda r: (r, 0)),
                     pl.BlockSpec((R_TILE, 1), lambda r: (r, 0))]
    in_specs.append(pl.BlockSpec((R_TILE, L), lambda r: (r, 0)))

    # VMEM budget: ~(2 in + 2 out double-buffered + roll/acc temporaries) x
    # block; capped well below v7x's 64 MiB physical VMEM per core.
    block_bytes = R_TILE * L * 4
    vmem_limit = int(min(48 * 2 ** 20, max(16 * 2 ** 20, 12 * block_bytes)))

    call = pl.pallas_call(
        kernel,
        out_shape=jax.ShapeDtypeStruct((B, L), out_dtype),
        grid=(grid_r,),
        in_specs=in_specs,
        out_specs=pl.BlockSpec((R_TILE, L), lambda r: (r, 0)),
        compiler_params=pltpu.CompilerParams(
            dimension_semantics=("parallel",),
            vmem_limit_bytes=vmem_limit),
    )

    if apply_chunk:
        def fn(x, starts, chunk_lens):
            xr = x.reshape(B, L)                      # free collapse reshape
            s32 = starts.astype(jnp.int32)
            s_lane = (s32 * C).reshape(B, 1)
            e_lane = ((s32 + chunk_lens.astype(jnp.int32)) * C).reshape(B, 1)
            out = call(s_lane, e_lane, xr)
            return out.reshape(B, T, C)
    else:
        def fn(x):
            out = call(x.reshape(B, L))
            return out.reshape(B, T, C)

    return jax.jit(fn)


def apply_augment_pallas(x, *, taps=None, starts=None, chunk_lens=None,
                         apply_fir=False, apply_chunk=False):
    """Apply (optionally) an FIR 'same' filter along time and (optionally) a
    per-batch time-chunk zeroing, in a single fused Pallas call.

    x          : (B, T, C) float array
    taps       : 1-D filter taps (required when apply_fir)
    starts     : (B,) int chunk start in samples (required when apply_chunk)
    chunk_lens : (B,) int chunk length in samples (required when apply_chunk)
    """
    B, T, C = x.shape
    if not apply_fir and not apply_chunk:
        return x
    taps_t = tuple(float(t) for t in np.asarray(taps)) if apply_fir else None
    fn = _build_augment_fn(int(B), int(T), int(C), jnp.dtype(x.dtype).name,
                           taps_t, bool(apply_fir), bool(apply_chunk))
    if apply_chunk:
        return fn(x, starts, chunk_lens)
    return fn(x)


# ----------------------------------------------------------------------------
# Augmentation "modules" backed by the fused Pallas kernel.
# ----------------------------------------------------------------------------
class DropFreqPallas:
    """Deterministic notch-like FIR filter (stand-in for speechbrain DropFreq)."""

    def __init__(self, kernel_size=11):
        K = kernel_size
        kk = np.arange(K, dtype=np.float32) - K // 2
        lp = np.exp(-0.5 * (kk / 2.0) ** 2)
        lp = lp / lp.sum()
        w = -lp
        w[K // 2] += 1.0                            # notch = delta - lowpass
        self.taps = tuple(float(v) for v in w)      # compile-time constants

    def forward(self, waveforms):
        return apply_augment_pallas(waveforms, taps=self.taps, apply_fir=True)

    __call__ = forward


class DropChunkPallas:
    """Deterministic time-chunk dropper (stand-in for speechbrain DropChunk)."""

    def __init__(self, drop_length=8, drop_start_frac=0.25):
        self.drop_length = drop_length
        self.drop_start_frac = drop_start_frac

    def chunk_params(self, waveforms, lengths):
        B, T, C = waveforms.shape
        starts = jnp.clip(
            jnp.floor(lengths * T * self.drop_start_frac), 0, T).astype(jnp.int32)
        chunk_lens = jnp.full((B,), self.drop_length, dtype=jnp.int32)
        return starts, chunk_lens

    def forward(self, waveforms, lengths):
        starts, chunk_lens = self.chunk_params(waveforms, lengths)
        return apply_augment_pallas(waveforms, starts=starts,
                                    chunk_lens=chunk_lens, apply_chunk=True)

    __call__ = forward


# ----------------------------------------------------------------------------
# Augmenter — faithful port of the PyTorch forward() semantics.
# ----------------------------------------------------------------------------
def lengths_arg_exists(func):
    spec = inspect.getfullargspec(func)
    return "lengths" in spec.args + spec.kwonlyargs


class Augmenter:
    def __init__(self, parallel_augment=False, parallel_augment_fixed_bs=False,
                 concat_original=False, min_augmentations=None,
                 max_augmentations=None, shuffle_augmentations=False,
                 repeat_augment=1, **augmentations):
        self.parallel_augment = parallel_augment
        self.parallel_augment_fixed_bs = parallel_augment_fixed_bs
        self.concat_original = concat_original
        self.augmentations = augmentations
        self.min_augmentations = min_augmentations
        self.max_augmentations = max_augmentations
        self.shuffle_augmentations = shuffle_augmentations
        self.repeat_augment = repeat_augment
        self.check_min_max_augmentations()
        if not isinstance(self.repeat_augment, int):
            raise ValueError("repeat_augment must be an integer.")
        if self.repeat_augment < 0:
            raise ValueError("repeat_augment must be greater than 0.")
        self.require_lengths = {}
        for aug_key, aug_fun in self.augmentations.items():
            self.require_lengths[aug_key] = lengths_arg_exists(aug_fun.forward)
        # deterministic RNG for augmentation-count / shuffle (host-side glue)
        self._rng = pyrandom.Random(0)

    def check_min_max_augmentations(self):
        if self.min_augmentations is None:
            self.min_augmentations = 1
        if self.max_augmentations is None:
            self.max_augmentations = len(self.augmentations)
        if self.max_augmentations > len(self.augmentations):
            self.max_augmentations = len(self.augmentations)
        if self.min_augmentations > len(self.augmentations):
            self.min_augmentations = len(self.augmentations)
        if self.max_augmentations < self.min_augmentations:
            raise ValueError(
                "max_augmentations cannot be smaller than min_augmentations ")
        if self.min_augmentations < 0:
            raise ValueError("min_augmentations cannot be smaller than 0.")
        if self.max_augmentations < 0:
            raise ValueError("max_augmentations cannot be smaller than 0.")

    def augment(self, x, lengths, selected_augmentations):
        next_input = x
        next_lengths = lengths
        output = []
        output_lengths = []
        out = x
        out_lengths = lengths

        if not self.parallel_augment:
            # Sequential path: fuse adjacent DropFreq -> DropChunk pairs into a
            # single Pallas kernel (one HBM round trip instead of two).
            k = 0
            n = len(selected_augmentations)
            while k < n:
                name = selected_augmentations[k]
                fun = self.augmentations[name]
                nxt_fun = (self.augmentations[selected_augmentations[k + 1]]
                           if k + 1 < n else None)
                if (isinstance(fun, DropFreqPallas)
                        and isinstance(nxt_fun, DropChunkPallas)):
                    starts, lens_i = nxt_fun.chunk_params(next_input, next_lengths)
                    out = apply_augment_pallas(
                        next_input, taps=fun.taps, starts=starts,
                        chunk_lens=lens_i, apply_fir=True, apply_chunk=True)
                    k += 2
                else:
                    if self.require_lengths[name]:
                        out = fun(next_input, lengths=next_lengths)
                    else:
                        out = fun(next_input)
                    if isinstance(out, tuple):
                        if len(out) == 2:
                            out, out_lengths = out
                        else:
                            raise ValueError(
                                "The function must return max two arguments "
                                "(Tensor, Length[optional])")
                    k += 1
                next_input = out
                next_lengths = out_lengths
            return out, out_lengths

        # Parallel path: every augmentation consumes the original input; the
        # outputs are concatenated on the batch axis.
        for k, augment_name in enumerate(selected_augmentations):
            augment_fun = self.augmentations[augment_name]
            idx = jnp.arange(x.shape[0])
            if self.parallel_augment_fixed_bs:
                idx_startstop = np.linspace(
                    0, x.shape[0], len(selected_augmentations) + 1).astype(int)
                idx = idx[idx_startstop[k]:idx_startstop[k + 1]]
            if self.require_lengths[augment_name]:
                out = augment_fun(next_input[idx, ...], lengths=next_lengths[idx])
            else:
                out = augment_fun(next_input[idx, ...])
            if isinstance(out, tuple):
                if len(out) == 2:
                    out, out_lengths = out
                else:
                    raise ValueError(
                        "The function must return max two arguments "
                        "(Tensor, Length[optional])")
            output.append(out)
            output_lengths.append(out_lengths[idx])
        output = jnp.concatenate(output, axis=0)
        output_lengths = jnp.concatenate(output_lengths, axis=0)
        return output, output_lengths

    def forward(self, x, lengths):
        N_augment = self._rng.randint(self.min_augmentations,
                                      self.max_augmentations)
        augmentations_lst = list(self.augmentations.keys())
        if (self.repeat_augment == 0 or N_augment == 0
                or len(self.augmentations) == 0):
            return x, lengths
        if self.shuffle_augmentations:
            self._rng.shuffle(augmentations_lst)
        selected_augmentations = augmentations_lst[0:N_augment]

        output_lst = []
        output_len_lst = []
        if self.concat_original:
            output_lst.append(x)
            output_len_lst.append(lengths)
        for _ in range(self.repeat_augment):
            output, output_lengths = self.augment(x, lengths,
                                                  selected_augmentations)
            output_lst.append(output)
            output_len_lst.append(output_lengths)
        output = jnp.concatenate(output_lst, axis=0)
        output_lengths = jnp.concatenate(output_len_lst, axis=0)
        return output, output_lengths

    __call__ = forward


# ----------------------------------------------------------------------------
if __name__ == "__main__":
    key = jax.random.PRNGKey(0)
    k1, k2, k3 = jax.random.split(key, 3)

    # --- Test 1: full Augmenter pipeline (fused FIR + chunk, concat original)
    B, T, C = 2, 64, 8
    x = jax.random.normal(k1, (B, T, C), dtype=jnp.float32)
    lengths = jnp.array([0.5, 1.0], dtype=jnp.float32)

    freq_dropper = DropFreqPallas(kernel_size=11)
    chunk_dropper = DropChunkPallas(drop_length=8, drop_start_frac=0.25)

    augment = Augmenter(
        parallel_augment=False,
        concat_original=True,
        min_augmentations=2,
        max_augmentations=2,
        shuffle_augmentations=False,
        repeat_augment=1,
        freq_dropper=freq_dropper,
        chunk_dropper=chunk_dropper,
    )

    out, out_lengths = augment(x, lengths)
    out = jax.block_until_ready(out)
    out_lengths = jax.block_until_ready(out_lengths)

    assert out.shape == (2 * B, T, C), out.shape
    assert out_lengths.shape == (2 * B,), out_lengths.shape

    # pure-JAX reference (FIR 'same' conv + chunk zeroing)
    w = jnp.asarray(freq_dropper.taps, dtype=jnp.float32)
    K = int(w.shape[0])
    P = K // 2
    xp = jnp.pad(x, ((0, 0), (P, K - 1 - P), (0, 0)))
    fir_ref = sum(xp[:, k:k + T, :] * w[k] for k in range(K))
    starts_r, lens_r = chunk_dropper.chunk_params(x, lengths)
    t_idx = jnp.arange(T)[None, :, None]
    keep = ((t_idx < starts_r[:, None, None])
            | (t_idx >= (starts_r + lens_r)[:, None, None]))
    ref = jnp.concatenate([x, jnp.where(keep, fir_ref, 0.0)], axis=0)
    np.testing.assert_allclose(np.asarray(out), np.asarray(ref),
                               rtol=1e-5, atol=1e-5)

    # --- Test 2: FIR-only path with a partial last row block (B=10, R_TILE=8)
    B2, T2, C2 = 10, 48, 8
    x2 = jax.random.normal(k2, (B2, T2, C2), dtype=jnp.float32)
    out2 = jax.block_until_ready(freq_dropper(x2))
    xp2 = jnp.pad(x2, ((0, 0), (P, K - 1 - P), (0, 0)))
    ref2 = sum(xp2[:, k:k + T2, :] * w[k] for k in range(K))
    np.testing.assert_allclose(np.asarray(out2), np.asarray(ref2),
                               rtol=1e-5, atol=1e-5)

    # --- Test 3: chunk-only path
    B3, T3, C3 = 4, 32, 4
    x3 = jax.random.normal(k3, (B3, T3, C3), dtype=jnp.float32)
    lengths3 = jnp.array([0.25, 0.5, 0.75, 1.0], dtype=jnp.float32)
    chunk3 = DropChunkPallas(drop_length=5, drop_start_frac=0.25)
    out3 = jax.block_until_ready(chunk3(x3, lengths3))
    s3, l3 = chunk3.chunk_params(x3, lengths3)
    t3 = jnp.arange(T3)[None, :, None]
    keep3 = (t3 < s3[:, None, None]) | (t3 >= (s3 + l3)[:, None, None])
    ref3 = jnp.where(keep3, x3, 0.0)
    np.testing.assert_allclose(np.asarray(out3), np.asarray(ref3),
                               rtol=1e-5, atol=1e-5)

    print("KERNEL_OK")
</pallas_src>

<mosaic_0001>
module attributes {stable_mosaic.version = 11 : i64} {
  func.func @kernel(%arg0: i32, %arg1: memref<2x1xi32, #tpu.memory_space<vmem>>, %arg2: memref<2x1xi32, #tpu.memory_space<vmem>>, %arg3: memref<2x512xf32, #tpu.memory_space<vmem>>, %arg4: memref<2x512xf32, #tpu.memory_space<vmem>>) attributes {dimension_semantics = [#tpu.dimension_semantics<parallel>], iteration_bounds = array<i64: 1>, scalar_prefetch = 0 : i64, scratch_operands = 0 : i64, tpu.core_type = #tpu.core_type<tc>, window_params = [{transform_indices = @transform_0, window_bounds = array<i64: 2, 1>}, {transform_indices = @transform_1, window_bounds = array<i64: 2, 1>}, {transform_indices = @transform_2, window_bounds = array<i64: 2, 512>}, {transform_indices = @transform_3, window_bounds = array<i64: 2, 512>}]} {
    %c0 = arith.constant 0 : index
    %c0_0 = arith.constant 0 : index
    %0 = vector.load %arg3[%c0, %c0_0] : memref<2x512xf32, #tpu.memory_space<vmem>>, vector<2x512xf32>
    %1 = tpu.iota {dimensions = array<i32: 1>} : vector<2x512xi32>
    %cst = arith.constant 0.000000e+00 : f32
    %2 = vector.broadcast %cst : f32 to vector<2x512xf32>
    %c40_i32 = arith.constant 40 : i32
    %3 = tpu.dynamic_rotate %0 by %c40_i32 dim 1 : vector<2x512xf32>, i32 -> vector<2x512xf32>
    %c40_i32_1 = arith.constant 40 : i32
    %4 = vector.broadcast %c40_i32_1 : i32 to vector<2x512xi32>
    %5 = arith.cmpi sge, %1, %4 : vector<2x512xi32>
    %cst_2 = arith.constant -0.00881222915 : f32
    %cst_3 = arith.constant 0.000000e+00 : f32
    %6 = vector.broadcast %cst_2 : f32 to vector<2x512xf32>
    %7 = vector.broadcast %cst_3 : f32 to vector<2x512xf32>
    %8 = arith.select %5, %6, %7 : vector<2x512xi1>, vector<2x512xf32>
    %9 = arith.mulf %3, %8 : vector<2x512xf32>
    %10 = arith.addf %2, %9 : vector<2x512xf32>
    %c32_i32 = arith.constant 32 : i32
    %11 = tpu.dynamic_rotate %0 by %c32_i32 dim 1 : vector<2x512xf32>, i32 -> vector<2x512xf32>
    %c32_i32_4 = arith.constant 32 : i32
    %12 = vector.broadcast %c32_i32_4 : i32 to vector<2x512xi32>
    %13 = arith.cmpi sge, %1, %12 : vector<2x512xi32>
    %cst_5 = arith.constant -0.027143579 : f32
    %cst_6 = arith.constant 0.000000e+00 : f32
    %14 = vector.broadcast %cst_5 : f32 to vector<2x512xf32>
    %15 = vector.broadcast %cst_6 : f32 to vector<2x512xf32>
    %16 = arith.select %13, %14, %15 : vector<2x512xi1>, vector<2x512xf32>
    %17 = arith.mulf %11, %16 : vector<2x512xf32>
    %18 = arith.addf %10, %17 : vector<2x512xf32>
    %c24_i32 = arith.constant 24 : i32
    %19 = tpu.dynamic_rotate %0 by %c24_i32 dim 1 : vector<2x512xf32>, i32 -> vector<2x512xf32>
    %c24_i32_7 = arith.constant 24 : i32
    %20 = vector.broadcast %c24_i32_7 : i32 to vector<2x512xi32>
    %21 = arith.cmpi sge, %1, %20 : vector<2x512xi32>
    %cst_8 = arith.constant -0.0651140511 : f32
    %cst_9 = arith.constant 0.000000e+00 : f32
    %22 = vector.broadcast %cst_8 : f32 to vector<2x512xf32>
    %23 = vector.broadcast %cst_9 : f32 to vector<2x512xf32>
    %24 = arith.select %21, %22, %23 : vector<2x512xi1>, vector<2x512xf32>
    %25 = arith.mulf %19, %24 : vector<2x512xf32>
    %26 = arith.addf %18, %25 : vector<2x512xf32>
    %c16_i32 = arith.constant 16 : i32
    %27 = tpu.dynamic_rotate %0 by %c16_i32 dim 1 : vector<2x512xf32>, i32 -> vector<2x512xf32>
    %c16_i32_10 = arith.constant 16 : i32
    %28 = vector.broadcast %c16_i32_10 : i32 to vector<2x512xi32>
    %29 = arith.cmpi sge, %1, %28 : vector<2x512xi32>
    %cst_11 = arith.constant -0.121649079 : f32
    %cst_12 = arith.constant 0.000000e+00 : f32
    %30 = vector.broadcast %cst_11 : f32 to vector<2x512xf32>
    %31 = vector.broadcast %cst_12 : f32 to vector<2x512xf32>
    %32 = arith.select %29, %30, %31 : vector<2x512xi1>, vector<2x512xf32>
    %33 = arith.mulf %27, %32 : vector<2x512xf32>
    %34 = arith.addf %26, %33 : vector<2x512xf32>
    %c8_i32 = arith.constant 8 : i32
    %35 = tpu.dynamic_rotate %0 by %c8_i32 dim 1 : vector<2x512xf32>, i32 -> vector<2x512xf32>
    %c8_i32_13 = arith.constant 8 : i32
    %36 = vector.broadcast %c8_i32_13 : i32 to vector<2x512xi32>
    %37 = arith.cmpi sge, %1, %36 : vector<2x512xi32>
    %cst_14 = arith.constant -0.176998362 : f32
    %cst_15 = arith.constant 0.000000e+00 : f32
    %38 = vector.broadcast %cst_14 : f32 to vector<2x512xf32>
    %39 = vector.broadcast %cst_15 : f32 to vector<2x512xf32>
    %40 = arith.select %37, %38, %39 : vector<2x512xi1>, vector<2x512xf32>
    %41 = arith.mulf %35, %40 : vector<2x512xf32>
    %42 = arith.addf %34, %41 : vector<2x512xf32>
    %cst_16 = arith.constant 0.799434542 : f32
    %43 = vector.broadcast %cst_16 : f32 to vector<2x512xf32>
    %44 = arith.mulf %0, %43 : vector<2x512xf32>
    %45 = arith.addf %42, %44 : vector<2x512xf32>
    %c504_i32 = arith.constant 504 : i32
    %46 = tpu.dynamic_rotate %0 by %c504_i32 dim 1 : vector<2x512xf32>, i32 -> vector<2x512xf32>
    %c504_i32_17 = arith.constant 504 : i32
    %47 = vector.broadcast %c504_i32_17 : i32 to vector<2x512xi32>
    %48 = arith.cmpi slt, %1, %47 : vector<2x512xi32>
    %cst_18 = arith.constant -0.176998362 : f32
    %cst_19 = arith.constant 0.000000e+00 : f32
    %49 = vector.broadcast %cst_18 : f32 to vector<2x512xf32>
    %50 = vector.broadcast %cst_19 : f32 to vector<2x512xf32>
    %51 = arith.select %48, %49, %50 : vector<2x512xi1>, vector<2x512xf32>
    %52 = arith.mulf %46, %51 : vector<2x512xf32>
    %53 = arith.addf %45, %52 : vector<2x512xf32>
    %c496_i32 = arith.constant 496 : i32
    %54 = tpu.dynamic_rotate %0 by %c496_i32 dim 1 : vector<2x512xf32>, i32 -> vector<2x512xf32>
    %c496_i32_20 = arith.constant 496 : i32
    %55 = vector.broadcast %c496_i32_20 : i32 to vector<2x512xi32>
    %56 = arith.cmpi slt, %1, %55 : vector<2x512xi32>
    %cst_21 = arith.constant -0.121649079 : f32
    %cst_22 = arith.constant 0.000000e+00 : f32
    %57 = vector.broadcast %cst_21 : f32 to vector<2x512xf32>
    %58 = vector.broadcast %cst_22 : f32 to vector<2x512xf32>
    %59 = arith.select %56, %57, %58 : vector<2x512xi1>, vector<2x512xf32>
    %60 = arith.mulf %54, %59 : vector<2x512xf32>
    %61 = arith.addf %53, %60 : vector<2x512xf32>
    %c488_i32 = arith.constant 488 : i32
    %62 = tpu.dynamic_rotate %0 by %c488_i32 dim 1 : vector<2x512xf32>, i32 -> vector<2x512xf32>
    %c488_i32_23 = arith.constant 488 : i32
    %63 = vector.broadcast %c488_i32_23 : i32 to vector<2x512xi32>
    %64 = arith.cmpi slt, %1, %63 : vector<2x512xi32>
    %cst_24 = arith.constant -0.0651140511 : f32
    %cst_25 = arith.constant 0.000000e+00 : f32
    %65 = vector.broadcast %cst_24 : f32 to vector<2x512xf32>
    %66 = vector.broadcast %cst_25 : f32 to vector<2x512xf32>
    %67 = arith.select %64, %65, %66 : vector<2x512xi1>, vector<2x512xf32>
    %68 = arith.mulf %62, %67 : vector<2x512xf32>
    %69 = arith.addf %61, %68 : vector<2x512xf32>
    %c480_i32 = arith.constant 480 : i32
    %70 = tpu.dynamic_rotate %0 by %c480_i32 dim 1 : vector<2x512xf32>, i32 -> vector<2x512xf32>
    %c480_i32_26 = arith.constant 480 : i32
    %71 = vector.broadcast %c480_i32_26 : i32 to vector<2x512xi32>
    %72 = arith.cmpi slt, %1, %71 : vector<2x512xi32>
    %cst_27 = arith.constant -0.027143579 : f32
    %cst_28 = arith.constant 0.000000e+00 : f32
    %73 = vector.broadcast %cst_27 : f32 to vector<2x512xf32>
    %74 = vector.broadcast %cst_28 : f32 to vector<2x512xf32>
    %75 = arith.select %72, %73, %74 : vector<2x512xi1>, vector<2x512xf32>
    %76 = arith.mulf %70, %75 : vector<2x512xf32>
    %77 = arith.addf %69, %76 : vector<2x512xf32>
    %c472_i32 = arith.constant 472 : i32
    %78 = tpu.dynamic_rotate %0 by %c472_i32 dim 1 : vector<2x512xf32>, i32 -> vector<2x512xf32>
    %c472_i32_29 = arith.constant 472 : i32
    %79 = vector.broadcast %c472_i32_29 : i32 to vector<2x512xi32>
    %80 = arith.cmpi slt, %1, %79 : vector<2x512xi32>
    %cst_30 = arith.constant -0.00881222915 : f32
    %cst_31 = arith.constant 0.000000e+00 : f32
    %81 = vector.broadcast %cst_30 : f32 to vector<2x512xf32>
    %82 = vector.broadcast %cst_31 : f32 to vector<2x512xf32>
    %83 = arith.select %80, %81, %82 : vector<2x512xi1>, vector<2x512xf32>
    %84 = arith.mulf %78, %83 : vector<2x512xf32>
    %85 = arith.addf %77, %84 : vector<2x512xf32>
    %c0_32 = arith.constant 0 : index
    %c0_33 = arith.constant 0 : index
    %86 = vector.load %arg1[%c0_32, %c0_33] : memref<2x1xi32, #tpu.memory_space<vmem>>, vector<2x1xi32>
    %87 = vector.broadcast %86 : vector<2x1xi32> to vector<2x512xi32>
    %88 = arith.cmpi slt, %1, %87 : vector<2x512xi32>
    %c0_34 = arith.constant 0 : index
    %c0_35 = arith.constant 0 : index
    %89 = vector.load %arg2[%c0_34, %c0_35] : memref<2x1xi32, #tpu.memory_space<vmem>>, vector<2x1xi32>
    %90 = vector.broadcast %89 : vector<2x1xi32> to vector<2x512xi32>
    %91 = arith.cmpi sge, %1, %90 : vector<2x512xi32>
    %92 = arith.ori %88, %91 : vector<2x512xi1>
    %cst_36 = arith.constant 0.000000e+00 : f32
    %93 = vector.broadcast %cst_36 : f32 to vector<2x512xf32>
    %94 = arith.select %92, %85, %93 : vector<2x512xi1>, vector<2x512xf32>
    %c0_37 = arith.constant 0 : index
    %c0_38 = arith.constant 0 : index
    %95 = vector.load %arg4[%c0_37, %c0_38] : memref<2x512xf32, #tpu.memory_space<vmem>>, vector<2x512xf32>
    tpu.vector_store %arg4[%c0_37, %c0_38], %94 {strides = array<i32>} : memref<2x512xf32, #tpu.memory_space<vmem>>, vector<2x512xf32>,
    return
  }
  func.func @transform_0(%arg0: i32) -> (i32, i32) {
    %c0_i32 = arith.constant 0 : i32
    %c0_i32_0 = arith.constant 0 : i32
    return %arg0, %c0_i32 : i32, i32
  }
  func.func @transform_1(%arg0: i32) -> (i32, i32) {
    %c0_i32 = arith.constant 0 : i32
    %c0_i32_0 = arith.constant 0 : i32
    return %arg0, %c0_i32 : i32, i32
  }
  func.func @transform_2(%arg0: i32) -> (i32, i32) {
    %c0_i32 = arith.constant 0 : i32
    %c0_i32_0 = arith.constant 0 : i32
    return %arg0, %c0_i32 : i32, i32
  }
  func.func @transform_3(%arg0: i32) -> (i32, i32) {
    %c0_i32 = arith.constant 0 : i32
    %c0_i32_0 = arith.constant 0 : i32
    return %arg0, %c0_i32 : i32, i32
  }
}

</mosaic_0001>

<bundles_post_ra>
// kernel: fn.1
= control target key start
LH: loop header
LB: loop body
LE: loop exit
PB: predicated region body
PF: predicated region fallthrough
CT: control target
= control target key end

     0   :  { %v15_v0 = vlaneseq  ;;  %v426_v2 = vmov 1983009808   ;;  %v427_v4 = vmov 0   ;;  %s429_s14 = smov 32   ;;  %s430_s15 = smov 24   ;;  %v438_v29 = vmov 0.0   ;;  %s601_s2 = inlined_call_operand.vmem [shape: f32[2,512], index: 2, kind: input, shape index: {}]   ;;  %s602_s1 = inlined_call_operand.vmem [shape: s32[2,1], index: 1, kind: input, shape index: {}]   ;;  %s603_s0 = inlined_call_operand.vmem [shape: s32[2,1], index: 0, kind: input, shape index: {}]   ;;  %s604_s3 = inlined_call_operand.vmem [shape: f32[2,512], index: 3, kind: output, shape index: {}]  }
   0x1   :  { %v462_v1 = vld [vmem:[%s601_s2] sm:$0xff]  ;;  %v23_v3 = vunpack.c.l.s4 %v426_v2  ;;  %424 = vset.pattern.permute.xlu1 %v427_v4  ;;  %423 = vset.pattern.permute.xlu0 %v427_v4  ;;  %s428_s2 = smov 40   ;;  %s431_s16 = smov 16  }
   0x2   :  { %v26_v5 = vshrl.u32 %v15_v0, 7  ;;  %v21_v7 = vcombine.high %v462_v1, %v462_v1  ;;  %s432_s17 = smov 8   ;;  %s433_s18 = smov 120   ;;  %v367_v13 = vld [vmem:[%s602_s1] sm:$0x3]  ;;  %v479_v23 = vand.u32 127, %v15_v0 }
   0x3   :  { %v24_v6 = vunpack.c.0.s8 %v23_v3  ;;  %s434_s19 = smov 112   ;;  %s435_s20 = smov 104   ;;  %v359_v14 = vld [vmem:[%s603_s0] sm:$0x3]  ;;  %v187_v28 = vmul.f32 0.79943454, %v462_v1 }
   0x4   :  { %s436_s21 = smov 96   ;;  %s437_s26 = smov 88   ;;  %vm55_vm0 = vcmp.ge.s32.totalorder %v479_v23, 40  ;;  %vm84_vm1 = vcmp.ge.s32.totalorder %v479_v23, 32  ;;  %vm79_vm2 = vcmp.lt.s32.totalorder %v479_v23, 32  ;;  %vm113_vm3 = vcmp.ge.s32.totalorder %v479_v23, 24 }
   0x5   :  { %v467_v8 = vsub.s32 %v24_v6, %v26_v5  ;;  %vm50_vm4 = vcmp.lt.s32.totalorder %v479_v23, 40  ;;  %vm142_vm5 = vcmp.ge.s32.totalorder %v479_v23, 16  ;;  %v59_v30 = vsel %vm55_vm0, -0.008812229, %v438_v29 }
   0x6   :  { %v88_v31 = vsel %vm84_vm1, -0.027143579, %v438_v29  ;;  %vm108_vm6 = vcmp.lt.s32.totalorder %v479_v23, 24  ;;  %v117_v34 = vsel %vm113_vm3, -0.06511405, %v438_v29  ;;  %vm137_vm7 = vcmp.lt.s32.totalorder %v479_v23, 16 }
   0x7   :  { %v28_v9 = vrot.slane %v462_v1, %v467_v8  ;;  %v35_v10 = vrot.slane %v21_v7, %v467_v8  ;;  %v146_v36 = vsel %vm142_vm5, -0.12164908, %v438_v29  ;;  %vm166_vm8 = vcmp.lt.s32.totalorder %v479_v23, 8 }
   0x8   :  { %vm171_vm9 = vcmp.ge.s32.totalorder %v479_v23, 8  ;;  %v507_v41 = vrot.slane %v187_v28, %v467_v8  ;;  %v189_v49 = vcombine.high %v187_v28, %v187_v28  ;;  %vm222_vm10 = vcmp.lt.s32.totalorder %v479_v23, 120 }
   0x9   :  { %42 = vrot.lane.b32.xlu0 %v28_v9, %s428_s2  ;;  %46 = vrot.lane.b32.xlu1 %v35_v10, %s428_s2  ;;  %v37_v11 = vcombine.high %v35_v10, %v35_v10  ;;  %v36_v12 = vcombine.high %v28_v9, %v28_v9  ;;  %vm251_vm12 = vcmp.lt.s32.totalorder %v479_v23, 112  ;;  %vm280_vm14 = vcmp.lt.s32.totalorder %v479_v23, 104 }
   0xa   :  { %v203_v7 = vrot.slane %v189_v49, %v467_v8  ;;  %vm309_vm0 = vcmp.lt.s32.totalorder %v479_v23, 96 }
   0xd   :  { %71 = vrot.lane.b32.xlu0 %v28_v9, %s429_s14  ;;  %48 = vrot.lane.b32.xlu1 %v37_v11, %s428_s2 }
  0x11   :  { %44 = vrot.lane.b32.xlu0 %v36_v12, %s428_s2  ;;  %73 = vrot.lane.b32.xlu1 %v36_v12, %s429_s14 }
  0x15   :  { %75 = vrot.lane.b32.xlu0 %v35_v10, %s429_s14  ;;  %77 = vrot.lane.b32.xlu1 %v37_v11, %s429_s14 }
  0x19   :  { %100 = vrot.lane.b32.xlu0 %v28_v9, %s430_s15  ;;  %102 = vrot.lane.b32.xlu1 %v36_v12, %s430_s15 }
  0x1d   :  { %104 = vrot.lane.b32.xlu0 %v35_v10, %s430_s15  ;;  %106 = vrot.lane.b32.xlu1 %v37_v11, %s430_s15 }
  0x21   :  { %129 = vrot.lane.b32.xlu0 %v28_v9, %s431_s16  ;;  %131 = vrot.lane.b32.xlu1 %v36_v12, %s431_s16 }
  0x25   :  { %133 = vrot.lane.b32.xlu0 %v35_v10, %s431_s16  ;;  %135 = vrot.lane.b32.xlu1 %v37_v11, %s431_s16 }
  0x29   :  { %158 = vrot.lane.b32.xlu0 %v28_v9, %s432_s17  ;;  %160 = vrot.lane.b32.xlu1 %v36_v12, %s432_s17 }
  0x2d   :  { %162 = vrot.lane.b32.xlu0 %v35_v10, %s432_s17  ;;  %164 = vrot.lane.b32.xlu1 %v37_v11, %s432_s17 }
  0x31   :  { %214 = vrot.lane.b32.xlu0 %v28_v9, %s433_s18  ;;  %216 = vrot.lane.b32.xlu1 %v36_v12, %s433_s18 }
  0x35   :  { %218 = vrot.lane.b32.xlu0 %v35_v10, %s433_s18  ;;  %220 = vrot.lane.b32.xlu1 %v37_v11, %s433_s18 }
  0x39   :  { %243 = vrot.lane.b32.xlu0 %v28_v9, %s434_s19  ;;  %245 = vrot.lane.b32.xlu1 %v36_v12, %s434_s19 }
  0x3d   :  { %247 = vrot.lane.b32.xlu0 %v35_v10, %s434_s19  ;;  %249 = vrot.lane.b32.xlu1 %v37_v11, %s434_s19 }
  0x41   :  { %272 = vrot.lane.b32.xlu0 %v28_v9, %s435_s20  ;;  %274 = vrot.lane.b32.xlu1 %v36_v12, %s435_s20 }
  0x45   :  { %276 = vrot.lane.b32.xlu0 %v35_v10, %s435_s20  ;;  %278 = vrot.lane.b32.xlu1 %v37_v11, %s435_s20 }
  0x49   :  { %301 = vrot.lane.b32.xlu0 %v28_v9, %s436_s21  ;;  %303 = vrot.lane.b32.xlu1 %v36_v12, %s436_s21 }
  0x4d   :  { %305 = vrot.lane.b32.xlu0 %v35_v10, %s436_s21  ;;  %307 = vrot.lane.b32.xlu1 %v37_v11, %s436_s21 }
  0x51   :  { %369 = vperm.xlu1 %424, %v367_v13   ;;  %361 = vperm.xlu0 %423, %v359_v14  }
  0x55   :  { %330 = vrot.lane.b32.xlu1 %v28_v9, %s437_s26  ;;  %332 = vrot.lane.b32.xlu0 %v36_v12, %s437_s26 }
  0x59   :  { %334 = vrot.lane.b32.xlu1 %v35_v10, %s437_s26  ;;  %336 = vrot.lane.b32.xlu0 %v37_v11, %s437_s26 }
  0x7b   :  { %v43_v15 = vpop.permute.xlu0 %42  ;;  %v47_v16 = vpop.permute.xlu1 %46 }
  0x7f   :  { %v72_v17 = vpop.permute.xlu0 %71  ;;  %v49_v18 = vpop.permute.xlu1 %48 }
  0x80   :  { %v54_v35 = vsel %vm50_vm4, %v49_v18, %v43_v15  ;;  %v51_v46 = vsel %vm50_vm4, %v47_v16, %v49_v18  ;;  %v204_v18 = vcombine.high %v507_v41, %v507_v41 }
  0x81   :  { %v63_v47 = vmul.f32 %v59_v30, %v54_v35  ;;  %v66_v4 = vmul.f32 -0.008812229, %v51_v46 }
  0x83   :  { %v45_v19 = vpop.permute.xlu0 %44  ;;  %v74_v20 = vpop.permute.xlu1 %73 }
  0x84   :  { %v53_v32 = vsel %vm50_vm4, %v43_v15, %v45_v19  ;;  %v82_v33 = vsel %vm79_vm2, %v72_v17, %v74_v20  ;;  %v52_v37 = vsel %vm50_vm4, %v45_v19, %v47_v16 }
  0x85   :  { %v64_v42 = vmul.f32 -0.008812229, %v53_v32  ;;  %v93_v43 = vmul.f32 -0.027143579, %v82_v33  ;;  %v65_v54 = vmul.f32 -0.008812229, %v52_v37 }
  0x86   :  { %v541_v33 = vadd.s32 384, %v479_v23 }
  0x87   :  { %v76_v21 = vpop.permute.xlu0 %75  ;;  %v78_v22 = vpop.permute.xlu1 %77  ;;  %v97_v60 = vadd.f32 %v93_v43, %v64_v42 }
  0x88   :  { %v81_v38 = vsel %vm79_vm2, %v74_v20, %v76_v21  ;;  %v83_v44 = vsel %vm79_vm2, %v78_v22, %v72_v17  ;;  %v80_v48 = vsel %vm79_vm2, %v76_v21, %v78_v22  ;;  %vm230_vm11 = vcmp.lt.s32.totalorder %v541_v33, 504 }
  0x89   :  { %v94_v50 = vmul.f32 -0.027143579, %v81_v38  ;;  %v92_v55 = vmul.f32 %v88_v31, %v83_v44  ;;  %v95_v61 = vmul.f32 -0.027143579, %v80_v48  ;;  %vm259_vm13 = vcmp.lt.s32.totalorder %v541_v33, 496 }
  0x8a   :  { %vm288_vm15 = vcmp.lt.s32.totalorder %v541_v33, 488  ;;  %vm317_vm1 = vcmp.lt.s32.totalorder %v541_v33, 480  ;;  %vm338_vm2 = vcmp.lt.s32.totalorder %v479_v23, 88  ;;  %vm346_vm3 = vcmp.lt.s32.totalorder %v541_v33, 472 }
  0x8b   :  { %v101_v24 = vpop.permute.xlu0 %100  ;;  %v103_v25 = vpop.permute.xlu1 %102  ;;  %v98_v5 = vadd.f32 %v94_v50, %v65_v54  ;;  %v96_v9 = vadd.f32 %v92_v55, %v63_v47  ;;  %v99_v15 = vadd.f32 %v95_v61, %v66_v4 }
  0x8c   :  { %v111_v45 = vsel %vm108_vm6, %v101_v24, %v103_v25 }
  0x8d   :  { %v122_v56 = vmul.f32 -0.06511405, %v111_v45 }
  0x8f   :  { %v105_v26 = vpop.permute.xlu0 %104  ;;  %v107_v27 = vpop.permute.xlu1 %106  ;;  %v126_v10 = vadd.f32 %v122_v56, %v97_v60 }
  0x90   :  { %v110_v51 = vsel %vm108_vm6, %v103_v25, %v105_v26  ;;  %v112_v52 = vsel %vm108_vm6, %v107_v27, %v101_v24  ;;  %v109_v57 = vsel %vm108_vm6, %v105_v26, %v107_v27  ;;  %v175_v25 = vsel %vm171_vm9, -0.17699836, %v438_v29 }
  0x91   :  { %v123_v0 = vmul.f32 -0.06511405, %v110_v51  ;;  %v121_v1 = vmul.f32 %v117_v34, %v112_v52  ;;  %v124_v6 = vmul.f32 -0.06511405, %v109_v57  ;;  %v205_v26 = vcombine.high %v203_v7, %v203_v7 }
  0x93   :  { %v130_v39 = vpop.permute.xlu0 %129  ;;  %v132_v40 = vpop.permute.xlu1 %131  ;;  %v127_v19 = vadd.f32 %v123_v0, %v98_v5  ;;  %v125_v20 = vadd.f32 %v121_v1, %v96_v9  ;;  %v128_v24 = vadd.f32 %v124_v6, %v99_v15  ;;  %v263_v5 = vsel %vm259_vm13, -0.12164908, %v438_v29 }
  0x94   :  { %v140_v53 = vsel %vm137_vm7, %v130_v39, %v132_v40 }
  0x95   :  { %v151_v2 = vmul.f32 -0.12164908, %v140_v53  ;;  %v234_v53 = vsel %vm230_vm11, -0.17699836, %v438_v29 }
  0x97   :  { %v134_v58 = vpop.permute.xlu0 %133  ;;  %v136_v59 = vpop.permute.xlu1 %135  ;;  %v155_v21 = vadd.f32 %v151_v2, %v126_v10 }
  0x98   :  { %v139_v62 = vsel %vm137_vm7, %v132_v40, %v134_v58  ;;  %v141_v63 = vsel %vm137_vm7, %v136_v59, %v130_v39  ;;  %v138_v3 = vsel %vm137_vm7, %v134_v58, %v136_v59 }
  0x99   :  { %v152_v11 = vmul.f32 -0.12164908, %v139_v62  ;;  %v150_v12 = vmul.f32 %v146_v36, %v141_v63  ;;  %v153_v16 = vmul.f32 -0.12164908, %v138_v3 }
  0x9b   :  { %v159_v13 = vpop.permute.xlu0 %158  ;;  %v161_v14 = vpop.permute.xlu1 %160  ;;  %v156_v27 = vadd.f32 %v152_v11, %v127_v19  ;;  %v154_v28 = vadd.f32 %v150_v12, %v125_v20  ;;  %v157_v34 = vadd.f32 %v153_v16, %v128_v24  ;;  %v292_v24 = vsel %vm288_vm15, -0.06511405, %v438_v29 }
  0x9c   :  { %v169_v17 = vsel %vm166_vm8, %v159_v13, %v161_v14 }
  0x9d   :  { %v180_v22 = vmul.f32 -0.17699836, %v169_v17 }
  0x9f   :  { %v184_v30 = vadd.f32 %v180_v22, %v155_v21  ;;  %v163_v31 = vpop.permute.xlu0 %162  ;;  %v165_v32 = vpop.permute.xlu1 %164 }
  0xa0   :  { %v168_v35 = vsel %vm166_vm8, %v161_v14, %v163_v31  ;;  %v167_v36 = vsel %vm166_vm8, %v163_v31, %v165_v32  ;;  %v170_v37 = vsel %vm166_vm8, %v165_v32, %v159_v13 }
  0xa1   :  { %v181_v38 = vmul.f32 -0.17699836, %v168_v35  ;;  %v179_v39 = vmul.f32 %v175_v25, %v170_v37  ;;  %v182_v40 = vmul.f32 -0.17699836, %v167_v36  ;;  %v211_v42 = vadd.f32 %v204_v18, %v184_v30 }
  0xa3   :  { %v185_v43 = vadd.f32 %v181_v38, %v156_v27  ;;  %v183_v44 = vadd.f32 %v179_v39, %v154_v28  ;;  %v186_v45 = vadd.f32 %v182_v40, %v157_v34  ;;  %v215_v46 = vpop.permute.xlu0 %214  ;;  %v217_v47 = vpop.permute.xlu1 %216 }
  0xa4   :  { %v225_v48 = vsel %vm222_vm10, %v215_v46, %v217_v47 }
  0xa5   :  { %v213_v49 = vadd.f32 %v205_v26, %v186_v45  ;;  %v210_v50 = vadd.f32 %v507_v41, %v183_v44  ;;  %v235_v51 = vmul.f32 -0.17699836, %v225_v48  ;;  %v212_v52 = vadd.f32 %v203_v7, %v185_v43 }
  0xa6   :  { %v321_v44 = vsel %vm317_vm1, -0.027143579, %v438_v29 }
  0xa7   :  { %v239_v54 = vadd.f32 %v235_v51, %v210_v50  ;;  %v219_v55 = vpop.permute.xlu0 %218  ;;  %v221_v56 = vpop.permute.xlu1 %220 }
  0xa8   :  { %v224_v57 = vsel %vm222_vm10, %v217_v47, %v219_v55  ;;  %v223_v58 = vsel %vm222_vm10, %v219_v55, %v221_v56  ;;  %v226_v59 = vsel %vm222_vm10, %v221_v56, %v215_v46 }
  0xa9   :  { %v236_v60 = vmul.f32 -0.17699836, %v224_v57  ;;  %v237_v61 = vmul.f32 -0.17699836, %v223_v58  ;;  %v238_v62 = vmul.f32 %v234_v53, %v226_v59  ;;  %v17_v59 = vadd.s32 128, %v479_v23 }
  0xab   :  { %v240_v41 = vadd.f32 %v236_v60, %v211_v42  ;;  %v241_v63 = vadd.f32 %v237_v61, %v212_v52  ;;  %v242_v0 = vadd.f32 %v238_v62, %v213_v49  ;;  %v244_v1 = vpop.permute.xlu0 %243  ;;  %v246_v2 = vpop.permute.xlu1 %245  ;;  %v18_v60 = vadd.s32 256, %v479_v23 }
  0xac   :  { %v254_v3 = vsel %vm251_vm12, %v244_v1, %v246_v2 }
  0xad   :  { %v264_v4 = vmul.f32 -0.12164908, %v254_v3 }
  0xaf   :  { %v268_v6 = vadd.f32 %v264_v4, %v239_v54  ;;  %v248_v7 = vpop.permute.xlu0 %247  ;;  %v250_v9 = vpop.permute.xlu1 %249 }
  0xb0   :  { %v253_v10 = vsel %vm251_vm12, %v246_v2, %v248_v7  ;;  %v252_v11 = vsel %vm251_vm12, %v248_v7, %v250_v9  ;;  %v255_v12 = vsel %vm251_vm12, %v250_v9, %v244_v1 }
  0xb1   :  { %v265_v13 = vmul.f32 -0.12164908, %v253_v10  ;;  %v266_v14 = vmul.f32 -0.12164908, %v252_v11  ;;  %v267_v15 = vmul.f32 %v263_v5, %v255_v12 }
  0xb3   :  { %v269_v16 = vadd.f32 %v265_v13, %v240_v41  ;;  %v270_v17 = vadd.f32 %v266_v14, %v241_v63  ;;  %v271_v18 = vadd.f32 %v267_v15, %v242_v0  ;;  %v273_v19 = vpop.permute.xlu0 %272  ;;  %v275_v20 = vpop.permute.xlu1 %274  ;;  %v350_v0 = vsel %vm346_vm3, -0.008812229, %v438_v29 }
  0xb4   :  { %v283_v21 = vsel %vm280_vm14, %v273_v19, %v275_v20 }
  0xb5   :  { %v293_v22 = vmul.f32 -0.06511405, %v283_v21 }
  0xb7   :  { %v297_v25 = vadd.f32 %v293_v22, %v268_v6  ;;  %v277_v26 = vpop.permute.xlu0 %276  ;;  %v279_v27 = vpop.permute.xlu1 %278 }
  0xb8   :  { %v282_v28 = vsel %vm280_vm14, %v275_v20, %v277_v26  ;;  %v281_v30 = vsel %vm280_vm14, %v277_v26, %v279_v27  ;;  %v284_v31 = vsel %vm280_vm14, %v279_v27, %v273_v19 }
  0xb9   :  { %v294_v32 = vmul.f32 -0.06511405, %v282_v28  ;;  %v295_v34 = vmul.f32 -0.06511405, %v281_v30  ;;  %v296_v35 = vmul.f32 %v292_v24, %v284_v31 }
  0xbb   :  { %v298_v36 = vadd.f32 %v294_v32, %v269_v16  ;;  %v299_v37 = vadd.f32 %v295_v34, %v270_v17  ;;  %v300_v38 = vadd.f32 %v296_v35, %v271_v18  ;;  %v302_v39 = vpop.permute.xlu0 %301  ;;  %v304_v40 = vpop.permute.xlu1 %303 }
  0xbc   :  { %v312_v42 = vsel %vm309_vm0, %v302_v39, %v304_v40 }
  0xbd   :  { %v322_v43 = vmul.f32 -0.027143579, %v312_v42 }
  0xbf   :  { %v326_v45 = vadd.f32 %v322_v43, %v297_v25  ;;  %v306_v46 = vpop.permute.xlu0 %305  ;;  %v308_v47 = vpop.permute.xlu1 %307 }
  0xc0   :  { %v311_v48 = vsel %vm309_vm0, %v304_v40, %v306_v46  ;;  %v310_v49 = vsel %vm309_vm0, %v306_v46, %v308_v47  ;;  %v313_v50 = vsel %vm309_vm0, %v308_v47, %v302_v39 }
  0xc1   :  { %v323_v51 = vmul.f32 -0.027143579, %v311_v48  ;;  %v324_v52 = vmul.f32 -0.027143579, %v310_v49  ;;  %v325_v53 = vmul.f32 %v321_v44, %v313_v50 }
  0xc3   :  { %v327_v54 = vadd.f32 %v323_v51, %v298_v36  ;;  %v328_v55 = vadd.f32 %v324_v52, %v299_v37  ;;  %v329_v56 = vadd.f32 %v325_v53, %v300_v38 }
  0xcc   :  { %v370_v57 = vpop.permute.xlu1 %369  ;;  %v362_v58 = vpop.permute.xlu0 %361 }
  0xcd   :  { %vm371_vm4 = vcmp.ge.s32.totalorder %v479_v23, %v370_v57  ;;  %vm363_vm5 = vcmp.lt.s32.totalorder %v479_v23, %v362_v58  ;;  %vm372_vm6 = vcmp.ge.s32.totalorder %v17_v59, %v370_v57  ;;  %vm373_vm7 = vcmp.ge.s32.totalorder %v18_v60, %v370_v57 }
  0xce   :  { %vm374_vm8 = vcmp.ge.s32.totalorder %v541_v33, %v370_v57  ;;  %vm364_vm9 = vcmp.lt.s32.totalorder %v17_v59, %v362_v58  ;;  %vm365_vm10 = vcmp.lt.s32.totalorder %v18_v60, %v362_v58  ;;  %vm366_vm11 = vcmp.lt.s32.totalorder %v541_v33, %v362_v58  ;;  %vm580_vm12 = vmor %vm363_vm5, %vm371_vm4 }
  0xcf   :  { %vm376_vm13 = vmor %vm364_vm9, %vm372_vm6 }
  0xd0   :  { %v331_v61 = vpop.permute.xlu1 %330  ;;  %v333_v62 = vpop.permute.xlu0 %332  ;;  %vm377_vm14 = vmor %vm365_vm10, %vm373_vm7 }
  0xd1   :  { %v341_v41 = vsel %vm338_vm2, %v331_v61, %v333_v62  ;;  %vm378_vm15 = vmor %vm366_vm11, %vm374_vm8 }
  0xd2   :  { %v351_v63 = vmul.f32 -0.008812229, %v341_v41 }
  0xd4   :  { %v355_v1 = vadd.f32 %v351_v63, %v326_v45  ;;  %v335_v2 = vpop.permute.xlu1 %334  ;;  %v337_v3 = vpop.permute.xlu0 %336 }
  0xd5   :  { %v340_v5 = vsel %vm338_vm2, %v333_v62, %v335_v2  ;;  %v339_v6 = vsel %vm338_vm2, %v335_v2, %v337_v3  ;;  %v342_v29 = vsel %vm338_vm2, %v337_v3, %v331_v61 }
  0xd6   :  { %v379_v7 = vsel %vm580_vm12, %v355_v1, 0.0  ;;  %v352_v9 = vmul.f32 -0.008812229, %v340_v5  ;;  %v353_v10 = vmul.f32 -0.008812229, %v339_v6  ;;  %v354_v11 = vmul.f32 %v350_v0, %v342_v29 }
  0xd8   :  { %v356_v12 = vadd.f32 %v352_v9, %v327_v54  ;;  %v357_v13 = vadd.f32 %v353_v10, %v328_v55  ;;  %v358_v14 = vadd.f32 %v354_v11, %v329_v56 }
  0xda   :  { %v380_v15 = vsel %vm376_vm13, %v356_v12, 0.0  ;;  %v381_v16 = vsel %vm377_vm14, %v357_v13, 0.0  ;;  %v382_v23 = vsel %vm378_vm15, %v358_v14, 0.0 }
  0xdb   :  { %v387_v17 = vcombine.low %v379_v7, %v380_v15  ;;  %v388_v18 = vcombine.low %v381_v16, %v382_v23 }
  0xdd   :  { %v395_v19 = vrot.slane %v387_v17, %v467_v8  ;;  %v402_v20 = vrot.slane %v388_v18, %v467_v8 }
  0xdf   :  { %v403_v21 = vcombine.low %v395_v19, %v402_v20 }
  0xe1   :  { %405 = vst [vmem:[%s604_s3] sm:$0xff] %v403_v21 }

</bundles_post_ra>
